<compile_context>
chip_gen: v7x
topology: tpu7x:2x2x1
jax: 0.10.0
libtpu: 0.0.40
codegen_flags: <defaults>
</compile_context>

<pallas_src>
import functools

import jax
import jax.numpy as jnp
from jax import lax
from jax.experimental import pallas as pl
from jax.experimental.pallas import tpu as pltpu


def _round_up(x, m):
    return ((x + m - 1) // m) * m


def _cdiv(a, b):
    return (a + b - 1) // b


def _reference(x, w1, b1, w2, b2):
    """Pure-JAX reference (also used as the small-problem fallback)."""
    pooled = jnp.mean(x.astype(jnp.float32), axis=-2)                 # (B, in_dim)
    h = jnp.dot(pooled, w1.astype(jnp.float32),
                precision=lax.Precision.HIGHEST) + jnp.reshape(b1, (1, -1))
    h = 0.5 * h * (1.0 + lax.erf(h * jnp.float32(0.7071067811865476)))
    return jnp.dot(h, w2.astype(jnp.float32),
                   precision=lax.Precision.HIGHEST) + jnp.reshape(b2, (1, -1))


def _action_projector_kernel(x_ref, w1_ref, b1_ref, w2_ref, b2_ref, o_ref,
                             acc_ref, *, tn, n_total, inv_n, mask_needed):
    """Grid = (batch tiles [parallel], N chunks [arbitrary reduction])."""
    nb = pl.program_id(1)

    @pl.when(nb == 0)
    def _init():
        acc_ref[...] = jnp.zeros_like(acc_ref)

    # ---- streaming pooled-sum of the current (tb, tn, in_dim) chunk --------
    if tn % 8 == 0 and tn > 8:
        n_sub = tn // 8

        def body(i, part):
            start = pl.multiple_of(i * 8, 8)
            sl = x_ref[:, pl.ds(start, 8), :].astype(jnp.float32)
            if mask_needed:
                row = nb * tn + i * 8 + lax.broadcasted_iota(
                    jnp.int32, (1, 8, 1), 1)
                sl = jnp.where(row < n_total, sl, 0.0)
            return part + jnp.sum(sl, axis=1)

        chunk_sum = lax.fori_loop(0, n_sub, body,
                                  jnp.zeros(acc_ref.shape, jnp.float32),
                                  unroll=(n_sub <= 8))
    else:
        sl = x_ref[...].astype(jnp.float32)
        if mask_needed:
            row = nb * tn + lax.broadcasted_iota(jnp.int32, (1, tn, 1), 1)
            sl = jnp.where(row < n_total, sl, 0.0)
        chunk_sum = jnp.sum(sl, axis=1)

    acc_ref[...] += chunk_sum

    # ---- MLP head, once per batch tile (last N chunk only) -----------------
    @pl.when(nb == pl.num_programs(1) - 1)
    def _finish():
        pooled = acc_ref[...] * jnp.float32(inv_n)                  # (tb, in_dim)
        h = jnp.dot(pooled, w1_ref[...],
                    preferred_element_type=jnp.float32) + b1_ref[...]
        # Exact (erf) GELU, matching torch.nn.GELU() default.
        h = 0.5 * h * (1.0 + lax.erf(h * jnp.float32(0.7071067811865476)))
        out = jnp.dot(h, w2_ref[...],
                      preferred_element_type=jnp.float32) + b2_ref[...]
        o_ref[...] = out.astype(o_ref.dtype)        # Dropout(p=0.0): identity


def _choose_tiles(B, N, in_dim, x_itemsize):
    # Batch tile: full batch if tiny (block == full dim is legal), else a
    # multiple of 8 chosen so the "parallel" batch axis has >=2 grid steps
    # (lets v7x split across its two TensorCores); capped at 64 rows.
    if B <= 8:
        tb = B
    else:
        tb = min(64, _round_up(_cdiv(B, 2), 8))
    # N chunk: bound the (double-buffered) x block to ~1 MiB per buffer so the
    # whole working set stays far below v5e's 16 MiB scoped default and v7x's
    # 64 MiB physical VMEM even with the resident weights.
    budget_bytes = 1 << 20
    rows = max(8, budget_bytes // max(1, tb * in_dim * x_itemsize))
    tn = N if N <= rows else max(8, (rows // 8) * 8)
    return tb, tn


def action_projector(x, w1, b1, w2, b2, *, small_problem_jax_fallback=False):
    """ActionProjector forward.

    x : (N, in_dim) -> (1, out_dim)    (original module contract)
        (B, N, in_dim) -> (B, out_dim) (batched extension)
    w1: (in_dim, in_dim),  b1: (in_dim,) or (1, in_dim)
    w2: (in_dim, out_dim), b2: (out_dim,) or (1, out_dim)
    Weights are stored pre-transposed as (in_features, out_features).
    """
    if x.ndim == 2:
        x = x[None]
    B, N, in_dim = x.shape
    out_dim = w2.shape[1]

    f32 = jnp.float32
    if x.dtype not in (jnp.float32, jnp.bfloat16):
        x = x.astype(f32)
    w1 = w1.astype(f32)
    w2 = w2.astype(f32)
    b1 = jnp.reshape(b1, (1, in_dim)).astype(f32)
    b2 = jnp.reshape(b2, (1, out_dim)).astype(f32)

    # Tiny problems: per-step pallas overhead dominates -> let XLA fuse it.
    # (Off by default so the demo below exercises the Pallas kernel.)
    if small_problem_jax_fallback and B * N * in_dim < (1 << 16):
        return _reference(x, w1, b1, w2, b2)

    # Only the OUTPUT lane dim is padded to 128 (unmasked vst).  The GEMM
    # contraction dim stays at in_dim and x itself is never padded or copied.
    out_p = _round_up(out_dim, 128)
    if out_p != out_dim:
        w2 = jnp.pad(w2, ((0, 0), (0, out_p - out_dim)))
        b2 = jnp.pad(b2, ((0, 0), (0, out_p - out_dim)))

    x_itemsize = jnp.dtype(x.dtype).itemsize
    tb, tn = _choose_tiles(B, N, in_dim, x_itemsize)
    grid_b = _cdiv(B, tb)
    grid_n = _cdiv(N, tn)
    mask_needed = (grid_n > 1) and (N % tn != 0)

    # VMEM working-set estimate -> explicit limit only when the conservative
    # per-chip defaults (16 MiB on v5e) could be too small.
    x_blk = tb * tn * in_dim * x_itemsize
    w_bytes = (in_dim * in_dim + in_dim * out_p + in_dim + out_p) * 4
    o_blk = tb * out_p * 4
    vmem_need = 2 * x_blk + 2 * w_bytes + 2 * o_blk + tb * in_dim * 4
    vmem_limit = None
    if vmem_need > (12 << 20):
        vmem_limit = int(min(max(vmem_need + (4 << 20), 32 << 20), 48 << 20))

    kernel = functools.partial(_action_projector_kernel, tn=tn, n_total=N,
                               inv_n=1.0 / N, mask_needed=mask_needed)

    def run(single_buffer_weights):
        wkw = (dict(pipeline_mode=pl.Buffered(1))
               if single_buffer_weights else {})
        return pl.pallas_call(
            kernel,
            out_shape=jax.ShapeDtypeStruct((B, out_p), f32),
            grid=(grid_b, grid_n),
            in_specs=[
                pl.BlockSpec((tb, tn, in_dim), lambda b, n: (b, n, 0)),
                pl.BlockSpec((in_dim, in_dim), lambda b, n: (0, 0), **wkw),
                pl.BlockSpec((1, in_dim), lambda b, n: (0, 0), **wkw),
                pl.BlockSpec((in_dim, out_p), lambda b, n: (0, 0), **wkw),
                pl.BlockSpec((1, out_p), lambda b, n: (0, 0), **wkw),
            ],
            out_specs=pl.BlockSpec((tb, out_p), lambda b, n: (b, 0)),
            scratch_shapes=[pltpu.VMEM((tb, in_dim), f32)],
            compiler_params=pltpu.CompilerParams(
                dimension_semantics=("parallel", "arbitrary"),
                vmem_limit_bytes=vmem_limit),
            cost_estimate=pl.CostEstimate(
                flops=2 * B * in_dim * (in_dim + out_p) + B * N * in_dim,
                transcendentals=B * in_dim,
                bytes_accessed=(x.size * x_itemsize + w_bytes + B * out_p * 4)),
        )(x, w1, b1, w2, b2)

    try:
        out = run(True)     # weights/biases single-buffered (VMEM headroom)
    except Exception:       # pipeline_mode unsupported by this JAX build
        out = run(False)

    return out if out_p == out_dim else out[:, :out_dim]


if __name__ == "__main__":
    B, N, in_dim, out_dim = 16, 8, 32, 64

    key = jax.random.PRNGKey(0)
    kx, k1, k2, k3, k4 = jax.random.split(key, 5)

    x = jax.random.normal(kx, (B, N, in_dim), dtype=jnp.float32)

    # Deterministic parameter init; weights pre-transposed as (in, out),
    # biases as PyTorch-style 1-D vectors.
    bound = 1.0 / (in_dim ** 0.5)
    w1 = jax.random.uniform(k1, (in_dim, in_dim), jnp.float32, -bound, bound)
    b1 = jax.random.uniform(k2, (in_dim,), jnp.float32, -bound, bound)
    w2 = jax.random.uniform(k3, (in_dim, out_dim), jnp.float32, -bound, bound)
    b2 = jax.random.uniform(k4, (out_dim,), jnp.float32, -bound, bound)

    # Batched path.
    out = jax.block_until_ready(action_projector(x, w1, b1, w2, b2))
    ref = jax.block_until_ready(_reference(x, w1, b1, w2, b2))
    assert out.shape == (B, out_dim)
    # Tolerance allows for bf16 MXU passes in either matmul path.
    assert jnp.allclose(out, ref, atol=5e-3, rtol=1e-2), (
        "batched mismatch vs reference, max abs err = "
        f"{float(jnp.max(jnp.abs(out - ref)))}")

    # Original 2-D module contract: x of shape (N, in_dim) -> (1, out_dim).
    out1 = jax.block_until_ready(action_projector(x[0], w1, b1, w2, b2))
    assert out1.shape == (1, out_dim)
    assert jnp.allclose(out1, ref[0:1], atol=5e-3, rtol=1e-2), "2D path mismatch"

    print("KERNEL_OK")
</pallas_src>

<mosaic_0001>
module attributes {stable_mosaic.version = 11 : i64} {
  func.func @_action_projector_kernel(%arg0: i32, %arg1: i32, %arg2: memref<8x8x32xf32, #tpu.memory_space<vmem>>, %arg3: memref<32x32xf32, #tpu.memory_space<vmem>>, %arg4: memref<1x32xf32, #tpu.memory_space<vmem>>, %arg5: memref<32x128xf32, #tpu.memory_space<vmem>>, %arg6: memref<1x128xf32, #tpu.memory_space<vmem>>, %arg7: memref<8x128xf32, #tpu.memory_space<vmem>>, %arg8: memref<8x32xf32, #tpu.memory_space<vmem>>) attributes {dimension_semantics = [#tpu.dimension_semantics<parallel>, #tpu.dimension_semantics<arbitrary>], iteration_bounds = array<i64: 2, 1>, scalar_prefetch = 0 : i64, scratch_operands = 1 : i64, tpu.core_type = #tpu.core_type<tc>, window_params = [{transform_indices = @transform_0, window_bounds = array<i64: 8, 8, 32>}, {pipeline_mode = #tpu.pipeline_mode<synchronous>, transform_indices = @transform_1, window_bounds = array<i64: 32, 32>}, {pipeline_mode = #tpu.pipeline_mode<synchronous>, transform_indices = @transform_2, window_bounds = array<i64: 1, 32>}, {pipeline_mode = #tpu.pipeline_mode<synchronous>, transform_indices = @transform_3, window_bounds = array<i64: 32, 128>}, {pipeline_mode = #tpu.pipeline_mode<synchronous>, transform_indices = @transform_4, window_bounds = array<i64: 1, 128>}, {transform_indices = @transform_5, window_bounds = array<i64: 8, 128>}]} {
    %c0_i32 = arith.constant 0 : i32
    %0 = arith.cmpi eq, %arg1, %c0_i32 : i32
    %1 = arith.extui %0 : i1 to i32
    %c0_i32_0 = arith.constant 0 : i32
    %2 = arith.cmpi ne, %1, %c0_i32_0 : i32
    scf.if %2 {
      %cst_9 = arith.constant 0.000000e+00 : f32
      %11 = vector.broadcast %cst_9 : f32 to vector<8x32xf32>
      %c0_10 = arith.constant 0 : index
      %c0_11 = arith.constant 0 : index
      %12 = vector.load %arg8[%c0_10, %c0_11] : memref<8x32xf32, #tpu.memory_space<vmem>>, vector<8x32xf32>
      tpu.vector_store %arg8[%c0_10, %c0_11], %11 {strides = array<i32>} : memref<8x32xf32, #tpu.memory_space<vmem>>, vector<8x32xf32>,
    } else {
    }
    %c0 = arith.constant 0 : index
    %c0_1 = arith.constant 0 : index
    %c0_2 = arith.constant 0 : index
    %3 = vector.load %arg2[%c0, %c0_1, %c0_2] : memref<8x8x32xf32, #tpu.memory_space<vmem>>, vector<8x8x32xf32>
    %cst = arith.constant dense<0.000000e+00> : vector<8x32xf32>
    %4 = vector.multi_reduction <add>, %3, %cst [1] : vector<8x8x32xf32> to vector<8x32xf32>
    %c0_3 = arith.constant 0 : index
    %c0_4 = arith.constant 0 : index
    %5 = vector.load %arg8[%c0_3, %c0_4] : memref<8x32xf32, #tpu.memory_space<vmem>>, vector<8x32xf32>
    %6 = arith.addf %5, %4 : vector<8x32xf32>
    %c0_5 = arith.constant 0 : index
    %c0_6 = arith.constant 0 : index
    %7 = vector.load %arg8[%c0_5, %c0_6] : memref<8x32xf32, #tpu.memory_space<vmem>>, vector<8x32xf32>
    tpu.vector_store %arg8[%c0_5, %c0_6], %6 {strides = array<i32>} : memref<8x32xf32, #tpu.memory_space<vmem>>, vector<8x32xf32>,
    %c0_i32_7 = arith.constant 0 : i32
    %8 = arith.cmpi eq, %arg1, %c0_i32_7 : i32
    %9 = arith.extui %8 : i1 to i32
    %c0_i32_8 = arith.constant 0 : i32
    %10 = arith.cmpi ne, %9, %c0_i32_8 : i32
    scf.if %10 {
      %c0_9 = arith.constant 0 : index
      %c0_10 = arith.constant 0 : index
      %11 = vector.load %arg8[%c0_9, %c0_10] : memref<8x32xf32, #tpu.memory_space<vmem>>, vector<8x32xf32>
      %cst_11 = arith.constant 1.250000e-01 : f32
      %12 = vector.broadcast %cst_11 : f32 to vector<8x32xf32>
      %13 = arith.mulf %11, %12 : vector<8x32xf32>
      %c0_12 = arith.constant 0 : index
      %c0_13 = arith.constant 0 : index
      %14 = vector.load %arg3[%c0_12, %c0_13] : memref<32x32xf32, #tpu.memory_space<vmem>>, vector<32x32xf32>
      %cst_14 = arith.constant dense<0.000000e+00> : vector<8x32xf32>
      %15 = tpu.matmul %13, %14, %cst_14 {dimension_numbers = #tpu.dot_dimension_numbers<[1], [0], [0], [1], [0, 0, 1, 1], [], []>} : vector<8x32xf32>, vector<32x32xf32>, vector<8x32xf32> -> vector<8x32xf32>
      %c0_15 = arith.constant 0 : index
      %c0_16 = arith.constant 0 : index
      %16 = vector.load %arg4[%c0_15, %c0_16] : memref<1x32xf32, #tpu.memory_space<vmem>>, vector<1x32xf32>
      %17 = vector.broadcast %16 : vector<1x32xf32> to vector<8x32xf32>
      %18 = arith.addf %15, %17 : vector<8x32xf32>
      %cst_17 = arith.constant 5.000000e-01 : f32
      %19 = vector.broadcast %cst_17 : f32 to vector<8x32xf32>
      %20 = arith.mulf %19, %18 : vector<8x32xf32>
      %cst_18 = arith.constant 0.707106769 : f32
      %21 = vector.broadcast %cst_18 : f32 to vector<8x32xf32>
      %22 = arith.mulf %18, %21 : vector<8x32xf32>
      %23 = math.erf %22 : vector<8x32xf32>
      %cst_19 = arith.constant 1.000000e+00 : f32
      %24 = vector.broadcast %cst_19 : f32 to vector<8x32xf32>
      %25 = arith.addf %24, %23 : vector<8x32xf32>
      %26 = arith.mulf %20, %25 : vector<8x32xf32>
      %c0_20 = arith.constant 0 : index
      %c0_21 = arith.constant 0 : index
      %27 = vector.load %arg5[%c0_20, %c0_21] : memref<32x128xf32, #tpu.memory_space<vmem>>, vector<32x128xf32>
      %cst_22 = arith.constant dense<0.000000e+00> : vector<8x128xf32>
      %28 = tpu.matmul %26, %27, %cst_22 {dimension_numbers = #tpu.dot_dimension_numbers<[1], [0], [0], [1], [0, 0, 1, 1], [], []>} : vector<8x32xf32>, vector<32x128xf32>, vector<8x128xf32> -> vector<8x128xf32>
      %c0_23 = arith.constant 0 : index
      %c0_24 = arith.constant 0 : index
      %29 = vector.load %arg6[%c0_23, %c0_24] : memref<1x128xf32, #tpu.memory_space<vmem>>, vector<1x128xf32>
      %30 = vector.broadcast %29 : vector<1x128xf32> to vector<8x128xf32>
      %31 = arith.addf %28, %30 : vector<8x128xf32>
      %c0_25 = arith.constant 0 : index
      %c0_26 = arith.constant 0 : index
      %32 = vector.load %arg7[%c0_25, %c0_26] : memref<8x128xf32, #tpu.memory_space<vmem>>, vector<8x128xf32>
      tpu.vector_store %arg7[%c0_25, %c0_26], %31 {strides = array<i32>} : memref<8x128xf32, #tpu.memory_space<vmem>>, vector<8x128xf32>,
    } else {
    }
    return
  }
  func.func @transform_0(%arg0: i32, %arg1: i32) -> (i32, i32, i32) {
    %c0_i32 = arith.constant 0 : i32
    %c0_i32_0 = arith.constant 0 : i32
    return %arg0, %arg1, %c0_i32 : i32, i32, i32
  }
  func.func @transform_1(%arg0: i32, %arg1: i32) -> (i32, i32) {
    %c0_i32 = arith.constant 0 : i32
    %c0_i32_0 = arith.constant 0 : i32
    %c0_i32_1 = arith.constant 0 : i32
    return %c0_i32, %c0_i32_0 : i32, i32
  }
  func.func @transform_2(%arg0: i32, %arg1: i32) -> (i32, i32) {
    %c0_i32 = arith.constant 0 : i32
    %c0_i32_0 = arith.constant 0 : i32
    %c0_i32_1 = arith.constant 0 : i32
    return %c0_i32, %c0_i32_0 : i32, i32
  }
  func.func @transform_3(%arg0: i32, %arg1: i32) -> (i32, i32) {
    %c0_i32 = arith.constant 0 : i32
    %c0_i32_0 = arith.constant 0 : i32
    %c0_i32_1 = arith.constant 0 : i32
    return %c0_i32, %c0_i32_0 : i32, i32
  }
  func.func @transform_4(%arg0: i32, %arg1: i32) -> (i32, i32) {
    %c0_i32 = arith.constant 0 : i32
    %c0_i32_0 = arith.constant 0 : i32
    %c0_i32_1 = arith.constant 0 : i32
    return %c0_i32, %c0_i32_0 : i32, i32
  }
  func.func @transform_5(%arg0: i32, %arg1: i32) -> (i32, i32) {
    %c0_i32 = arith.constant 0 : i32
    %c0_i32_0 = arith.constant 0 : i32
    return %arg0, %c0_i32 : i32, i32
  }
}

module attributes {stable_mosaic.version = 11 : i64} {
  func.func @_action_projector_kernel(%arg0: i32, %arg1: i32, %arg2: memref<8x8x32xf32, #tpu.memory_space<vmem>>, %arg3: memref<32x32xf32, #tpu.memory_space<vmem>>, %arg4: memref<1x32xf32, #tpu.memory_space<vmem>>, %arg5: memref<32x128xf32, #tpu.memory_space<vmem>>, %arg6: memref<1x128xf32, #tpu.memory_space<vmem>>, %arg7: memref<8x128xf32, #tpu.memory_space<vmem>>, %arg8: memref<8x32xf32, #tpu.memory_space<vmem>>) attributes {dimension_semantics = [#tpu.dimension_semantics<parallel>, #tpu.dimension_semantics<arbitrary>], iteration_bounds = array<i64: 2, 1>, scalar_prefetch = 0 : i64, scratch_operands = 1 : i64, tpu.core_type = #tpu.core_type<tc>, window_params = [{transform_indices = @transform_0, window_bounds = array<i64: 8, 8, 32>}, {pipeline_mode = #tpu.pipeline_mode<synchronous>, transform_indices = @transform_1, window_bounds = array<i64: 32, 32>}, {pipeline_mode = #tpu.pipeline_mode<synchronous>, transform_indices = @transform_2, window_bounds = array<i64: 1, 32>}, {pipeline_mode = #tpu.pipeline_mode<synchronous>, transform_indices = @transform_3, window_bounds = array<i64: 32, 128>}, {pipeline_mode = #tpu.pipeline_mode<synchronous>, transform_indices = @transform_4, window_bounds = array<i64: 1, 128>}, {transform_indices = @transform_5, window_bounds = array<i64: 8, 128>}]} {
    %c0_i32 = arith.constant 0 : i32
    %0 = arith.cmpi eq, %arg1, %c0_i32 : i32
    %1 = arith.extui %0 : i1 to i32
    %c0_i32_0 = arith.constant 0 : i32
    %2 = arith.cmpi ne, %1, %c0_i32_0 : i32
    scf.if %2 {
      %cst_9 = arith.constant 0.000000e+00 : f32
      %11 = vector.broadcast %cst_9 : f32 to vector<8x32xf32>
      %c0_10 = arith.constant 0 : index
      %c0_11 = arith.constant 0 : index
      %12 = vector.load %arg8[%c0_10, %c0_11] : memref<8x32xf32, #tpu.memory_space<vmem>>, vector<8x32xf32>
      tpu.vector_store %arg8[%c0_10, %c0_11], %11 {strides = array<i32>} : memref<8x32xf32, #tpu.memory_space<vmem>>, vector<8x32xf32>,
    } else {
    }
    %c0 = arith.constant 0 : index
    %c0_1 = arith.constant 0 : index
    %c0_2 = arith.constant 0 : index
    %3 = vector.load %arg2[%c0, %c0_1, %c0_2] : memref<8x8x32xf32, #tpu.memory_space<vmem>>, vector<8x8x32xf32>
    %cst = arith.constant dense<0.000000e+00> : vector<8x32xf32>
    %4 = vector.multi_reduction <add>, %3, %cst [1] : vector<8x8x32xf32> to vector<8x32xf32>
    %c0_3 = arith.constant 0 : index
    %c0_4 = arith.constant 0 : index
    %5 = vector.load %arg8[%c0_3, %c0_4] : memref<8x32xf32, #tpu.memory_space<vmem>>, vector<8x32xf32>
    %6 = arith.addf %5, %4 : vector<8x32xf32>
    %c0_5 = arith.constant 0 : index
    %c0_6 = arith.constant 0 : index
    %7 = vector.load %arg8[%c0_5, %c0_6] : memref<8x32xf32, #tpu.memory_space<vmem>>, vector<8x32xf32>
    tpu.vector_store %arg8[%c0_5, %c0_6], %6 {strides = array<i32>} : memref<8x32xf32, #tpu.memory_space<vmem>>, vector<8x32xf32>,
    %c0_i32_7 = arith.constant 0 : i32
    %8 = arith.cmpi eq, %arg1, %c0_i32_7 : i32
    %9 = arith.extui %8 : i1 to i32
    %c0_i32_8 = arith.constant 0 : i32
    %10 = arith.cmpi ne, %9, %c0_i32_8 : i32
    scf.if %10 {
      %c0_9 = arith.constant 0 : index
      %c0_10 = arith.constant 0 : index
      %11 = vector.load %arg8[%c0_9, %c0_10] : memref<8x32xf32, #tpu.memory_space<vmem>>, vector<8x32xf32>
      %cst_11 = arith.constant 1.250000e-01 : f32
      %12 = vector.broadcast %cst_11 : f32 to vector<8x32xf32>
      %13 = arith.mulf %11, %12 : vector<8x32xf32>
      %c0_12 = arith.constant 0 : index
      %c0_13 = arith.constant 0 : index
      %14 = vector.load %arg3[%c0_12, %c0_13] : memref<32x32xf32, #tpu.memory_space<vmem>>, vector<32x32xf32>
      %cst_14 = arith.constant dense<0.000000e+00> : vector<8x32xf32>
      %15 = tpu.matmul %13, %14, %cst_14 {dimension_numbers = #tpu.dot_dimension_numbers<[1], [0], [0], [1], [0, 0, 1, 1], [], []>} : vector<8x32xf32>, vector<32x32xf32>, vector<8x32xf32> -> vector<8x32xf32>
      %c0_15 = arith.constant 0 : index
      %c0_16 = arith.constant 0 : index
      %16 = vector.load %arg4[%c0_15, %c0_16] : memref<1x32xf32, #tpu.memory_space<vmem>>, vector<1x32xf32>
      %17 = vector.broadcast %16 : vector<1x32xf32> to vector<8x32xf32>
      %18 = arith.addf %15, %17 : vector<8x32xf32>
      %cst_17 = arith.constant 5.000000e-01 : f32
      %19 = vector.broadcast %cst_17 : f32 to vector<8x32xf32>
      %20 = arith.mulf %19, %18 : vector<8x32xf32>
      %cst_18 = arith.constant 0.707106769 : f32
      %21 = vector.broadcast %cst_18 : f32 to vector<8x32xf32>
      %22 = arith.mulf %18, %21 : vector<8x32xf32>
      %23 = math.erf %22 : vector<8x32xf32>
      %cst_19 = arith.constant 1.000000e+00 : f32
      %24 = vector.broadcast %cst_19 : f32 to vector<8x32xf32>
      %25 = arith.addf %24, %23 : vector<8x32xf32>
      %26 = arith.mulf %20, %25 : vector<8x32xf32>
      %c0_20 = arith.constant 0 : index
      %c0_21 = arith.constant 0 : index
      %27 = vector.load %arg5[%c0_20, %c0_21] : memref<32x128xf32, #tpu.memory_space<vmem>>, vector<32x128xf32>
      %cst_22 = arith.constant dense<0.000000e+00> : vector<8x128xf32>
      %28 = tpu.matmul %26, %27, %cst_22 {dimension_numbers = #tpu.dot_dimension_numbers<[1], [0], [0], [1], [0, 0, 1, 1], [], []>} : vector<8x32xf32>, vector<32x128xf32>, vector<8x128xf32> -> vector<8x128xf32>
      %c0_23 = arith.constant 0 : index
      %c0_24 = arith.constant 0 : index
      %29 = vector.load %arg6[%c0_23, %c0_24] : memref<1x128xf32, #tpu.memory_space<vmem>>, vector<1x128xf32>
      %30 = vector.broadcast %29 : vector<1x128xf32> to vector<8x128xf32>
      %31 = arith.addf %28, %30 : vector<8x128xf32>
      %c0_25 = arith.constant 0 : index
      %c0_26 = arith.constant 0 : index
      %32 = vector.load %arg7[%c0_25, %c0_26] : memref<8x128xf32, #tpu.memory_space<vmem>>, vector<8x128xf32>
      tpu.vector_store %arg7[%c0_25, %c0_26], %31 {strides = array<i32>} : memref<8x128xf32, #tpu.memory_space<vmem>>, vector<8x128xf32>,
    } else {
    }
    return
  }
  func.func @transform_0(%arg0: i32, %arg1: i32) -> (i32, i32, i32) {
    %c0_i32 = arith.constant 0 : i32
    %c0_i32_0 = arith.constant 0 : i32
    return %arg0, %arg1, %c0_i32 : i32, i32, i32
  }
  func.func @transform_1(%arg0: i32, %arg1: i32) -> (i32, i32) {
    %c0_i32 = arith.constant 0 : i32
    %c0_i32_0 = arith.constant 0 : i32
    %c0_i32_1 = arith.constant 0 : i32
    return %c0_i32, %c0_i32_0 : i32, i32
  }
  func.func @transform_2(%arg0: i32, %arg1: i32) -> (i32, i32) {
    %c0_i32 = arith.constant 0 : i32
    %c0_i32_0 = arith.constant 0 : i32
    %c0_i32_1 = arith.constant 0 : i32
    return %c0_i32, %c0_i32_0 : i32, i32
  }
  func.func @transform_3(%arg0: i32, %arg1: i32) -> (i32, i32) {
    %c0_i32 = arith.constant 0 : i32
    %c0_i32_0 = arith.constant 0 : i32
    %c0_i32_1 = arith.constant 0 : i32
    return %c0_i32, %c0_i32_0 : i32, i32
  }
  func.func @transform_4(%arg0: i32, %arg1: i32) -> (i32, i32) {
    %c0_i32 = arith.constant 0 : i32
    %c0_i32_0 = arith.constant 0 : i32
    %c0_i32_1 = arith.constant 0 : i32
    return %c0_i32, %c0_i32_0 : i32, i32
  }
  func.func @transform_5(%arg0: i32, %arg1: i32) -> (i32, i32) {
    %c0_i32 = arith.constant 0 : i32
    %c0_i32_0 = arith.constant 0 : i32
    return %arg0, %c0_i32 : i32, i32
  }
}

</mosaic_0001>

<bundles_post_ra>
// kernel: tpu_custom_call.1
= control target key start
LH: loop header
LB: loop body
LE: loop exit
PB: predicated region body
PF: predicated region fallthrough
CT: control target
= control target key end

     0   :  { %10 = vsyncpa [#allocation4], 0  ;;  %s1336_s0 = inlined_call_operand.hbm [shape: f32[16,8,32], index: 0, kind: input, shape index: {}]   ;;  %s1337_s1 = inlined_call_operand.hbm [shape: f32[32,32], index: 1, kind: input, shape index: {}]   ;;  %s1338_s2 = inlined_call_operand.vmem [shape: f32[1,32], index: 2, kind: input, shape index: {}]   ;;  %s1339_s3 = inlined_call_operand.hbm [shape: f32[32,128], index: 3, kind: input, shape index: {}]   ;;  %s1340_s4 = inlined_call_operand.vmem [shape: f32[1,128], index: 4, kind: input, shape index: {}]   ;;  %s1341_s5 = inlined_call_operand.hbm [shape: f32[16,128], index: 5, kind: output, shape index: {}]  }
   0x1   :  { %12 = vsyncpa [#allocation4 + $0x1], 0 }
   0x2   :  { %13 = vsyncpa [#allocation7], 0 }
   0x3   :  { %14 = vsyncpa [#allocation5], 0 }
   0x4   :  { %16 = vsyncpa [#allocation5 + $0x1], 0  ;;  %s1047_s18 = smov 0   ;;  %s1049_s19 = smov 0  }
   0x5   :  { %s1051_s20 = smov 0   ;;  %s1053_s21 = smov 0  }
   0x6   :  { %s1055_s22 = smov 0   ;;  %s1057_s23 = smov 0  }
   0x7 LB: > { %s677_s24 = sadd.s32 4294967295, %s1006_s23   ;;  %s678_s25 = sadd.s32 4294967294, %s1006_s23   ;;  %s1006_s23 = sphi %s1057_s23, %s22_s23   ;;  %s1002_s22 = sphi %s1055_s22, %s1365_s22   ;;  %s998_s21 = sphi %s1053_s21, %s1364_s21   ;;  %s994_s20 = sphi %s1051_s20, %s1363_s20   ;;  %s990_s19 = sphi %s1049_s19, %s1362_s19   ;;  %s986_s18 = sphi %s1047_s18, %s1361_s18  }
   0x8   : > { %p56_p0 = scmp.ne.s32.totalorder %s990_s19, %s986_s18  ;;  %p1081_p1 = scmp.eq.s32.totalorder %s677_s24, 0 }
   0x9   : > { %p1085_p2 = scmp.eq.s32.totalorder %s677_s24, 1  ;;  %p170_p3 = scmp.eq.s32.totalorder %s678_s25, 1 }
   0xa   : > { %s1347_s26 = scalar_select %p1081_p1, 1, 0 }
   0xb   : > { %p1091_p4 = por %p1081_p1, %p56_p0  ;;  %p679_p5 = scmp.ge.s32.totalorder %s1006_s23, 1 }
   0xc   : > { %p1096_p6 = por %p170_p3, %p56_p0  ;;  %p177_p7 = scmp.lt.s32.totalorder %s1006_s23, 3 }
   0xd   : > { %s1349_s28 = scalar_select %p1091_p4, 1, 0 }
   0xe   : > { %s1350_s29 = scalar_select %p1096_p6, 1, 0 }
   0xf   : > { %p1101_p8 = pnand %p679_p5, %p177_p7  ;;  %s1008_s6 = smov [#allocation6]  }
  0x10   : > { %s189_s7 = sshll.u32 %s1008_s6, 4  ;;  %s1009_s9 = smov [#allocation8]   ;;  %s1105_s7 = int_to_ptr.vmem [resolvable:$true] %s189_s7 }
  0x11   : > { %p756_p9 = pneg %p1101_p8  ;;  %s205_s10 = sshll.u32 %s1009_s9, 4  ;;  %s1116_s10 = int_to_ptr.vmem [resolvable:$true] %s205_s10 }
  0x12   : > { %s834_s13 = scalar_lea.hbm %s1337_s1, 512 }
  0x13   : > { %p1112_p11 = pnand %p756_p9, %p1081_p1  ;;  %p835_p12 = scmp.ne.s32.totalorder %s1337_s1, %s834_s13 }
  0x14   : > { %p841_p5 = scmp.lt.u32.totalorder %s834_s13, %s1337_s1 }
  0x15   : > { %p836_p13 = pneg %p1112_p11 }
  0x17   : > { %p837_p0 = pnand %p836_p13, %p835_p12 }
  0x19   : > { %p838_p3 = pneg %p837_p0 }
  0x1b   : > { %p843_p7 = pnand %p841_p5, %p838_p3 }
  0x1d   : > { %846 = shalt.err (!%p843_p7)
}
  0x1e   : > { %s847_s24 = scalar_lea.vmem %s1105_s7, 512  ;;  %p855_p1 = scmp.lt.s32.totalorder %s1105_s7, %s1105_s7 }
  0x1f   : > { %p848_p9 = scmp.ne.s32.totalorder %s1105_s7, %s847_s24  ;;  %p856_p12 = scmp.lt.s32.totalorder %s847_s24, %s847_s24 }
  0x21   : > { %p850_p10 = pnand %p848_p9, %p836_p13  ;;  %p857_p0 = por %p856_p12, %p855_p1 }
  0x23   : > { %p851_p6 = pneg %p850_p10 }
  0x25   : > { %p858_p4 = pnand %p857_p0, %p851_p6 }
  0x27   : > { %861 = shalt.err (!%p858_p4)
}
  0x28   : > { %s1345_s25 = smov 128   ;;  %s1011_s6 = smov 8  }
  0x29   : > { %759 = dma.hbm_to_vmem [thread:$0]  (!%p1112_p11), %s1337_s1, 512, %s1105_s7, [#allocation7], %s1345_s25, %s1345_s25, %s1011_s6  }
  0x2a   : > { %s862_s14 = scalar_lea.hbm %s1339_s3, 512 }
  0x2b   : > { %p863_p1 = scmp.ne.s32.totalorder %s1339_s3, %s862_s14  ;;  %p869_p10 = scmp.lt.u32.totalorder %s862_s14, %s1339_s3 }
  0x2d   : > { %p865_p4 = pnand %p863_p1, %p836_p13 }
  0x2f   : > { %p866_p6 = pneg %p865_p4 }
  0x31   : > { %p871_p3 = pnand %p869_p10, %p866_p6 }
  0x33   : > { %874 = shalt.err (!%p871_p3)
}
  0x34   : > { %s875_s7 = scalar_lea.vmem %s1116_s10, 512  ;;  %p883_p12 = scmp.lt.s32.totalorder %s1116_s10, %s1116_s10 }
  0x35   : > { %p876_p5 = scmp.ne.s32.totalorder %s1116_s10, %s875_s7  ;;  %p884_p0 = scmp.lt.s32.totalorder %s875_s7, %s875_s7 }
  0x37   : > { %p878_p7 = pnand %p876_p5, %p836_p13  ;;  %p885_p1 = por %p884_p0, %p883_p12 }
  0x39   : > { %p879_p9 = pneg %p878_p7 }
  0x3b   : > { %p886_p4 = pnand %p885_p1, %p879_p9 }
  0x3d   : > { %889 = shalt.err (!%p886_p4)
}
  0x3e   : > { %762 = dma.hbm_to_vmem [thread:$0]  (!%p1112_p11), %s1339_s3, 512, %s1116_s10, [#allocation7], %s1345_s25, %s1345_s25, %s1011_s6  }
  0x3f   : > { %s34_s8 = sadd.s32 1, %s1002_s22  ;;  %s43_s12 = sadd.s32 1, %s994_s20 }
  0x40   : > { %p36_p13 = scmp.ge.s32.totalorder %s34_s8, 2  ;;  %p50_p6 = scmp.ne.s32.totalorder %s994_s20, %s990_s19 }
  0x41   : > { %p51_p10 = scmp.eq.s32.totalorder %s1006_s23, 0  ;;  %p773_p3 = scmp.lt.s32.totalorder %s1006_s23, 2 }
  0x42   : > { %s1367_s8 = smov (%p36_p13, %s34_s8), 0  ;;  %p1186_p7 = por %p1085_p2, %p50_p6 }
  0x43   : > { %p52_p5 = por %p51_p10, %p50_p6  ;;  %s38_s14 = ssub.s32 %s1002_s22, %s1367_s8 }
  0x44   : > { %s1353_s13 = scalar_select %p1186_p7, 1, 0 }
  0x45   : > { %s222_s15 = sand.u32 1, %s994_s20   ;;  %p41_p9 = scmp.eq.s32.totalorder %s38_s14, 0 }
  0x46   : > { %s683_s10 = sshll.u32 %s222_s15, 6  ;;  %s699_s16 = sshll.u32 %s1002_s22, 10 }
  0x47   : > { %s1195_s17 = scalar_select %p41_p9, %s994_s20, %s43_s12  }
  0x48   : > { %s1200_s9 = scalar_lea.hbm %s1336_s0, %s699_s16  ;;  %s226_s27 = scalar_lea.vmem [#allocation3], %s683_s10 }
  0x49   : > { %s234_s11 = sshll.u32 %s226_s27, 4  ;;  %p1204_p2 = pnand %p773_p3, %p52_p5  ;;  %s1208_s11 = int_to_ptr.vmem [resolvable:$true] %s234_s11 }
  0x4a   : > { %s1210_s12 = scalar_lea.sflag [#allocation4], %s222_s15  ;;  %s890_s14 = scalar_lea.hbm %s1200_s9, 1024 }
  0x4b   : > { %p891_p11 = scmp.ne.s32.totalorder %s1200_s9, %s890_s14  ;;  %p892_p12 = pneg %p1204_p2 }
  0x4c   : > { %s895_s24 = scalar_lea.hbm %s1336_s0, 2048  ;;  %p896_p4 = scmp.lt.u32.totalorder %s1200_s9, %s1336_s0 }
  0x4d   : > { %p893_p0 = pnand %p892_p12, %p891_p11  ;;  %p897_p13 = scmp.lt.u32.totalorder %s895_s24, %s890_s14 }
  0x4e   : > { %p899_p10 = scmp.lt.u32.totalorder %s890_s14, %s1200_s9 }
  0x4f   : > { %p894_p1 = pneg %p893_p0  ;;  %p898_p6 = por %p897_p13, %p896_p4 }
  0x51   : > { %p900_p3 = por %p899_p10, %p898_p6 }
  0x53   : > { %p901_p5 = pnand %p900_p3, %p894_p1 }
  0x55   : > { %904 = shalt.err (!%p901_p5)
}
  0x56   : > { %s905_s15 = scalar_lea.vmem %s1208_s11, 1024  ;;  %s1012_s10 = smov [#allocation3]  }
  0x57   : > { %p906_p9 = scmp.ne.s32.totalorder %s1208_s11, %s905_s15  ;;  %s910_s16 = sshll.u32 %s1012_s10, 4  ;;  %s911_s16 = int_to_ptr.vmem [resolvable:$false] %s910_s16 }
  0x58   : > { %s912_s7 = scalar_lea.vmem %s911_s16, 2048  ;;  %p913_p7 = scmp.lt.s32.totalorder %s1208_s11, %s911_s16 }
  0x59   : > { %p908_p11 = pnand %p906_p9, %p892_p12  ;;  %p914_p4 = scmp.lt.s32.totalorder %s912_s7, %s905_s15 }
  0x5b   : > { %p909_p0 = pneg %p908_p11  ;;  %p915_p13 = por %p914_p4, %p913_p7 }
  0x5d   : > { %p916_p6 = pnand %p915_p13, %p909_p0 }
  0x5f   : > { %919 = shalt.err (!%p916_p6)
}
  0x60   : > { %s1355_s14 = smov 128   ;;  %246 = sbr.rel (%p1101_p8) target bundleno = 601 (0x259), region = 40 }
  0x61   : > { %766 = dma.hbm_to_vmem [thread:$0]  (!%p1204_p2), %s1200_s9, 1024, %s1208_s11, %s1210_s12, %s1355_s14, %s1355_s14, %s1011_s6  }
  0x62   : > { %s1244_s24 = sand.u32 (!%p1101_p8), 1, %s990_s19   ;;  %p1356_p7 = scmp.ne.s32.totalorder (!%p1101_p8), %s1349_s28, 0 }
  0x63   : > { %s687_s27 = sshll.u32 (!%p1101_p8), %s1244_s24, 6  ;;  %s249_s15 = scalar_lea.sflag (!%p1101_p8), [#allocation4], %s1244_s24 }
  0x64   : > { %s252_s10 = scalar_lea.vmem (!%p1101_p8), [#allocation3], %s687_s27 }
  0x67   : > { %973 = dma.done.wait (%p1356_p7), %s249_s15, 1024  }
  0x68   : > { %975 = vsyncadd (%p1356_p7), %s249_s15, 4294966272  ;;  %p1357_p12 = scmp.ne.s32.totalorder %s1347_s26, 0 }
  0x6a   : > { %977 = dma.done.wait (%p1357_p12), [#allocation7], 1024  }
  0x6b   : > { %979 = vsyncadd (%p1357_p12), [#allocation7], 4294966272  ;;  %vm292_vm0 = vcmask 261120   ;;  %v1013_v0 = vmov 0.0|0.0   ;;  %v1014_v1 = vmov 0.0   ;;  %vm1015_vm1 = vmmov 0  }
  0x6c   : > { %732 = vmatprep.subr.bf16.mxu0 %v1013_v0  ;;  %293 = vst.msk [vmem:[#allocation2] sm:$0xff] %vm292_vm0, %v1014_v1  ;;  %738 = vmatprep.subr.bf16.mxu1 %v1013_v0  ;;  %v390_v2 = vld [vmem:[#allocation6] sm:$0xff]  ;;  %v391_v3 = vld [vmem:[#allocation6 + $0x8] sm:$0xff]  ;;  %v392_v4 = vld [vmem:[#allocation6 + $0x10] sm:$0xff]  ;;  %vm368_vm2 = vcmask 1041409   ;;  %vm370_vm3 = vcmask 1042434  }
  0x6d   : > { %718 = vmatprep.mubr.msk.f32.mxu0 %vm1015_vm1, %v1014_v1  ;;  %729 = vmatprep.mubr.msk.f32.mxu1 %vm1015_vm1, %v1014_v1  ;;  %v733_v5 = vpack.c.bf16 %v391_v3, %v390_v2  ;;  %v393_v6 = vld [vmem:[#allocation6 + $0x18] sm:$0xff]  ;;  %v294_v7 = vld [vmem:[%s252_s10] sm:$0xff]  ;;  %v295_v8 = vld [vmem:[%s252_s10 + $0x8] sm:$0xff]  ;;  %vm372_vm4 = vcmask 1043459   ;;  %vm374_vm5 = vcmask 1044484   ;;  %vm376_vm6 = vcmask 1045509  }
  0x6e   : > { %v296_v9 = vld [vmem:[%s252_s10 + $0x10] sm:$0xff]  ;;  %v297_v10 = vld [vmem:[%s252_s10 + $0x18] sm:$0xff]  ;;  %v298_v11 = vld [vmem:[%s252_s10 + $0x20] sm:$0xff]  ;;  %v303_v12 = vsel %vm292_vm0, %v294_v7, 0.0  ;;  %v310_v13 = vsel %vm292_vm0, %v295_v8, 0.0  ;;  %v736_v14 = vpack.c.bf16 %v393_v6, %v392_v4  ;;  %vm378_vm7 = vcmask 1046534  }
  0x6f   : > { %734 = vmatpush3.bf16.msra.mxu0 %v733_v5  ;;  %v299_v15 = vld [vmem:[%s252_s10 + $0x28] sm:$0xff]  ;;  %v300_v16 = vld [vmem:[%s252_s10 + $0x30] sm:$0xff]  ;;  %v301_v17 = vld [vmem:[%s252_s10 + $0x38] sm:$0xff]  ;;  %v304_v18 = vrot.slane %v303_v12, 4  ;;  %v311_v19 = vrot.slane %v310_v13, 4  ;;  %v317_v20 = vsel %vm292_vm0, %v296_v9, 0.0 }
  0x70   : > { %735 = vmatprep.subr.bf16.mxu0 %v1013_v0  ;;  %v318_v21 = vrot.slane %v317_v20, 4  ;;  %v324_v22 = vsel %vm292_vm0, %v297_v10, 0.0  ;;  %v331_v23 = vsel %vm292_vm0, %v298_v11, 0.0  ;;  %v338_v24 = vsel %vm292_vm0, %v299_v15, 0.0  ;;  %s690_s30 = sshll.u32 %s1244_s24, 3  ;;  %s696_s9 = sshll.u32 %s998_s21, 7 }
  0x71   : > { %v305_v25 = vadd.f32 %v304_v18, %v303_v12  ;;  %v312_v26 = vadd.f32 %v311_v19, %v310_v13  ;;  %v325_v27 = vrot.slane %v324_v22, 4  ;;  %v332_v28 = vrot.slane %v331_v23, 4  ;;  %s286_s11 = scalar_lea.vmem [#allocation9], %s690_s30  ;;  %s1287_s14 = scalar_lea.hbm %s1341_s5, %s696_s9 }
  0x72   : > { %v319_v29 = vadd.f32 %v318_v21, %v317_v20  ;;  %v339_v30 = vrot.slane %v338_v24, 4  ;;  %v345_v31 = vsel %vm292_vm0, %v300_v16, 0.0  ;;  %v352_v32 = vsel %vm292_vm0, %v301_v17, 0.0  ;;  %v479_v20 = vld [vmem:[#allocation8] sm:$0xff]  ;;  %v480_v21 = vld [vmem:[#allocation8 + $0x8] sm:$0xff]  ;;  %s578_s12 = sshll.u32 %s286_s11, 4  ;;  %s1289_s12 = int_to_ptr.vmem [resolvable:$true] %s578_s12 }
  0x73   : > { %737 = vmatpush3.bf16.msra.mxu0 %v736_v14  ;;  %v306_v33 = vrot.slane %v305_v25, 2  ;;  %v313_v34 = vrot.slane %v312_v26, 2  ;;  %v326_v35 = vadd.f32 %v325_v27, %v324_v22  ;;  %v333_v36 = vadd.f32 %v332_v28, %v331_v23  ;;  %v359_v13 = vld [vmem:[#allocation2] sm:$0xff]  ;;  %v481_v23 = vld [vmem:[#allocation8 + $0x10] sm:$0xff]  ;;  %s565_s27 = scalar_lea.sflag [#allocation5], %s1244_s24  ;;  %s920_s15 = scalar_lea.vmem %s1289_s12, 128 }
  0x74   : > { %v320_v37 = vrot.slane %v319_v29, 2  ;;  %v340_v38 = vadd.f32 %v339_v30, %v338_v24  ;;  %v346_v39 = vrot.slane %v345_v31, 4  ;;  %v353_v40 = vrot.slane %v352_v32, 4  ;;  %v482_v24 = vld [vmem:[#allocation8 + $0x18] sm:$0xff]  ;;  %p921_p8 = scmp.ne.s32.totalorder %s1289_s12, %s920_s15  ;;  %p1358_p2 = scmp.ne.s32.totalorder %s1353_s13, 0 }
  0x75   : > { %v307_v41 = vadd.f32 %v306_v33, %v305_v25  ;;  %v314_v42 = vadd.f32 %v313_v34, %v312_v26  ;;  %v327_v43 = vrot.slane %v326_v35, 2  ;;  %v334_v44 = vrot.slane %v333_v36, 2  ;;  %v691_v26 = vld [vmem:[%s1338_s2] ss:$0 sm:$0xff]  ;;  %s1016_s21 = smov [#allocation9]  }
  0x76   : > { %v321_v45 = vadd.f32 %v320_v37, %v319_v29  ;;  %v341_v46 = vrot.slane %v340_v38, 2  ;;  %v347_v47 = vadd.f32 %v346_v39, %v345_v31  ;;  %v354_v48 = vadd.f32 %v353_v40, %v352_v32  ;;  %v693_v34 = vld [vmem:[%s1340_s4] ss:$0 sm:$0xff]  ;;  %p922_p1 = pnand %p921_p8, %p1358_p2  ;;  %s924_s10 = sshll.u32 %s1016_s21, 4  ;;  %s925_s10 = int_to_ptr.vmem [resolvable:$false] %s924_s10 }
  0x77   : > { %v308_v49 = vrot.slane %v307_v41, 1  ;;  %v315_v50 = vrot.slane %v314_v42, 1  ;;  %v328_v51 = vadd.f32 %v327_v43, %v326_v35  ;;  %v335_v52 = vadd.f32 %v334_v44, %v333_v36  ;;  %s926_s26 = scalar_lea.vmem %s925_s10, 256  ;;  %p927_p3 = scmp.lt.s32.totalorder %s1289_s12, %s925_s10 }
  0x78   : > { %v322_v53 = vrot.slane %v321_v45, 1  ;;  %v342_v54 = vadd.f32 %v341_v46, %v340_v38  ;;  %v348_v55 = vrot.slane %v347_v47, 2  ;;  %v355_v56 = vrot.slane %v354_v48, 2  ;;  %p923_p10 = pneg %p922_p1  ;;  %p928_p5 = scmp.lt.s32.totalorder %s926_s26, %s920_s15 }
  0x79   : > { %v309_v57 = vadd.f32 %v308_v49, %v307_v41  ;;  %v316_v58 = vadd.f32 %v315_v50, %v314_v42  ;;  %v329_v59 = vrot.slane %v328_v51, 1  ;;  %v336_v60 = vrot.slane %v335_v52, 1 }
  0x7a   : > { %v323_v61 = vadd.f32 %v322_v53, %v321_v45  ;;  %v343_v62 = vrot.slane %v342_v54, 1  ;;  %v349_v63 = vadd.f32 %v348_v55, %v347_v47  ;;  %v356_v1 = vadd.f32 %v355_v56, %v354_v48  ;;  %p929_p9 = por %p928_p5, %p927_p3 }
  0x7b   : > { %v330_v2 = vadd.f32 %v329_v59, %v328_v51  ;;  %v337_v3 = vadd.f32 %v336_v60, %v335_v52  ;;  %v369_v4 = vsel %vm368_vm2, %v316_v58, %v309_v57  ;;  %vm380_vm8 = vcmask 1047559  }
  0x7c   : > { %v344_v5 = vadd.f32 %v343_v62, %v342_v54  ;;  %v350_v6 = vrot.slane %v349_v63, 1  ;;  %v357_v7 = vrot.slane %v356_v1, 1  ;;  %v371_v8 = vsel %vm370_vm3, %v323_v61, %v369_v4  ;;  %p930_p11 = pnand %p929_p9, %p923_p10 }
  0x7d   : > { %v373_v9 = vsel %vm372_vm4, %v330_v2, %v371_v8  ;;  %v739_v22 = vpack.c.bf16 %v480_v21, %v479_v20  ;;  %v742_v25 = vpack.c.bf16 %v482_v24, %v481_v23 }
  0x7e   : > { %v351_v10 = vadd.f32 %v350_v6, %v349_v63  ;;  %v358_v11 = vadd.f32 %v357_v7, %v356_v1  ;;  %v375_v12 = vsel %vm374_vm5, %v337_v3, %v373_v9 }
  0x7f   : > { %v377_v14 = vsel %vm376_vm6, %v344_v5, %v375_v12  ;;  %740 = vmatpush3.bf16.msra.mxu1 %v739_v22 }
  0x80   : > { %v379_v15 = vsel %vm378_vm7, %v351_v10, %v377_v14  ;;  %741 = vmatprep.subr.bf16.mxu1 %v1013_v0 }
  0x81   : > { %v381_v16 = vsel %vm380_vm8, %v358_v11, %v379_v15 }
  0x82   : > { %v383_v17 = vadd.f32 %v381_v16, %v359_v13 }
  0x83   : > { %743 = vmatpush3.bf16.msra.mxu1 %v742_v25 }
  0x84   : > { %384 = vst.msk [vmem:[#allocation2] sm:$0xff] %vm292_vm0, %v383_v17 }
  0x8b   : > { %v388_v18 = vld [vmem:[#allocation2] sm:$0xff] }
  0x8c   : > { %v389_v19 = vmul.f32 0.125, %v388_v18 }
  0x8e   : > { %719 = vmatmul.mubr.msk.f32.vlgmr.msra.gmra.mrb[0].mxu0 %vm292_vm0, %v389_v19 }
 0x161   : > { %v470_v27 = vpop.f32.mrb[0].mxu0 }
 0x162   : > { %v471_v28 = vadd.f32 %v691_v26, %v470_v27  ;;  %v720_v29 = vpop.f32.mrb[1].mxu0 }
 0x164   : > { %v475_v30 = vmul.f32 0.70710677, %v471_v28  ;;  %v474_v32 = vmul.f32 0.5, %v471_v28 }
 0x166   : > { %832 = verf.f32 %v475_v30 }
 0x170   : > { %v833_v31 = vpop.eup %832 }
 0x171   : > { %v477_v33 = vadd.f32 1.0, %v833_v31 }
 0x173   : > { %v478_v0 = vmul.f32 %v477_v33, %v474_v32 }
 0x175   : > { %730 = vmatmul.mubr.msk.f32.vlgmr.msra.gmra.mrb[0].mxu1 %vm292_vm0, %v478_v0 }
 0x248   : > { %v559_v35 = vpop.f32.mrb[0].mxu1 }
 0x249   : > { %v560_v36 = vadd.f32 %v693_v34, %v559_v35  ;;  %v731_v37 = vpop.f32.mrb[1].mxu1 }
 0x24b   : > { %563 = vst [vmem:[%s286_s11] sm:$0xff] %v560_v36 }
 0x24c   : > { %933 = shalt.err (!%p930_p11)
}
 0x24d   : > { %s934_s24 = scalar_lea.hbm %s1287_s14, 128  ;;  %s938_s25 = scalar_lea.hbm %s1341_s5, 256 }
 0x24e   : > { %p935_p0 = scmp.ne.s32.totalorder %s1287_s14, %s934_s24  ;;  %p939_p6 = scmp.lt.u32.totalorder %s1287_s14, %s1341_s5 }
 0x24f   : > { %p940_p7 = scmp.lt.u32.totalorder %s938_s25, %s934_s24  ;;  %p942_p8 = scmp.lt.u32.totalorder %s934_s24, %s1287_s14 }
 0x250   : > { %p936_p4 = pnand %p935_p0, %p1358_p2 }
 0x251   : > { %p941_p12 = por %p940_p7, %p939_p6 }
 0x252   : > { %p937_p13 = pneg %p936_p4 }
 0x253   : > { %p943_p1 = por %p942_p8, %p941_p12 }
 0x255   : > { %p944_p10 = pnand %p943_p1, %p937_p13 }
 0x257   : > { %947 = shalt.err (!%p944_p10)
}
 0x258   : > { %754 = dma.vmem_to_hbm [thread:$0]  (%p1358_p2), %s1289_s12, 128, %s1287_s14, %s565_s27  }
 0x259 PF: > { %s590_s11 = sand.u32 1, %s986_s18   ;;  %p1359_p3 = scmp.ne.s32.totalorder %s1350_s29, 0 }
 0x25a   : > { %p1360_p5 = scmp.ge.s32.totalorder %s1006_s23, 2  ;;  %s591_s16 = scalar_lea.sflag [#allocation5], %s590_s11 }
 0x25c   : > { %p768_p9 = pnand %p1360_p5, %p1359_p3 }
 0x25e   : > { %981 = dma.done.wait (!%p768_p9), %s591_s16, 128  }
 0x25f   : > { %983 = vsyncadd (!%p768_p9), %s591_s16, 4294967168  ;;  %s22_s23 = sadd.s32 1, %s1006_s23   ;;  %s1361_s18 = smov %s990_s19 }
 0x260   : > { %p19_p11 = scmp.ge.s32.totalorder %s22_s23, 4   ;;  %s1362_s19 = smov %s994_s20 }
 0x261   : > { %s1363_s20 = smov %s1195_s17  ;;  %s1364_s21 = smov %s1002_s22 }
 0x262   : > { %s1365_s22 = smov %s1367_s8  ;;  %21 = sbr.rel (!%p19_p11) target bundleno = 7 (0x7), region = 101 }
 0x269   :  { %596 = vsyncpa [#allocation4], 1 }
 0x26a   :  { %598 = vsyncpa [#allocation4 + $0x1], 1 }
 0x26b   :  { %599 = vsyncpa [#allocation7], 1 }
 0x26c   :  { %600 = vsyncpa [#allocation5], 1 }
 0x26d   :  { %602 = vsyncpa [#allocation5 + $0x1], 1 }

// kernel: tpu_custom_call.1
= control target key start
LH: loop header
LB: loop body
LE: loop exit
PB: predicated region body
PF: predicated region fallthrough
CT: control target
= control target key end

     0   :  { %10 = vsyncpa [#allocation4], 0  ;;  %s1336_s0 = inlined_call_operand.hbm [shape: f32[16,8,32], index: 0, kind: input, shape index: {}]   ;;  %s1337_s1 = inlined_call_operand.hbm [shape: f32[32,32], index: 1, kind: input, shape index: {}]   ;;  %s1338_s2 = inlined_call_operand.vmem [shape: f32[1,32], index: 2, kind: input, shape index: {}]   ;;  %s1339_s3 = inlined_call_operand.hbm [shape: f32[32,128], index: 3, kind: input, shape index: {}]   ;;  %s1340_s4 = inlined_call_operand.vmem [shape: f32[1,128], index: 4, kind: input, shape index: {}]   ;;  %s1341_s5 = inlined_call_operand.hbm [shape: f32[16,128], index: 5, kind: output, shape index: {}]  }
   0x1   :  { %12 = vsyncpa [#allocation4 + $0x1], 0 }
   0x2   :  { %13 = vsyncpa [#allocation7], 0 }
   0x3   :  { %14 = vsyncpa [#allocation5], 0 }
   0x4   :  { %16 = vsyncpa [#allocation5 + $0x1], 0  ;;  %s1047_s18 = smov 0   ;;  %s1049_s19 = smov 0  }
   0x5   :  { %s1051_s20 = smov 0   ;;  %s1053_s21 = smov 0  }
   0x6   :  { %s1055_s22 = smov 0   ;;  %s1057_s23 = smov 0  }
   0x7 LB: > { %s677_s24 = sadd.s32 4294967295, %s1006_s23   ;;  %s678_s25 = sadd.s32 4294967294, %s1006_s23   ;;  %s1006_s23 = sphi %s1057_s23, %s22_s23   ;;  %s1002_s22 = sphi %s1055_s22, %s1365_s22   ;;  %s998_s21 = sphi %s1053_s21, %s1364_s21   ;;  %s994_s20 = sphi %s1051_s20, %s1363_s20   ;;  %s990_s19 = sphi %s1049_s19, %s1362_s19   ;;  %s986_s18 = sphi %s1047_s18, %s1361_s18  }
   0x8   : > { %p56_p0 = scmp.ne.s32.totalorder %s990_s19, %s986_s18  ;;  %p1081_p1 = scmp.eq.s32.totalorder %s677_s24, 0 }
   0x9   : > { %p1085_p2 = scmp.eq.s32.totalorder %s677_s24, 1  ;;  %p170_p3 = scmp.eq.s32.totalorder %s678_s25, 1 }
   0xa   : > { %s1347_s26 = scalar_select %p1081_p1, 1, 0 }
   0xb   : > { %p1091_p4 = por %p1081_p1, %p56_p0  ;;  %p679_p5 = scmp.ge.s32.totalorder %s1006_s23, 1 }
   0xc   : > { %p1096_p6 = por %p170_p3, %p56_p0  ;;  %p177_p7 = scmp.lt.s32.totalorder %s1006_s23, 3 }
   0xd   : > { %s1349_s28 = scalar_select %p1091_p4, 1, 0 }
   0xe   : > { %s1350_s29 = scalar_select %p1096_p6, 1, 0 }
   0xf   : > { %p1101_p8 = pnand %p679_p5, %p177_p7  ;;  %s1008_s6 = smov [#allocation6]  }
  0x10   : > { %s189_s7 = sshll.u32 %s1008_s6, 4  ;;  %s1009_s9 = smov [#allocation8]   ;;  %s1105_s7 = int_to_ptr.vmem [resolvable:$true] %s189_s7 }
  0x11   : > { %p756_p9 = pneg %p1101_p8  ;;  %s205_s10 = sshll.u32 %s1009_s9, 4  ;;  %s1116_s10 = int_to_ptr.vmem [resolvable:$true] %s205_s10 }
  0x12   : > { %s834_s13 = scalar_lea.hbm %s1337_s1, 512 }
  0x13   : > { %p1112_p11 = pnand %p756_p9, %p1081_p1  ;;  %p835_p12 = scmp.ne.s32.totalorder %s1337_s1, %s834_s13 }
  0x14   : > { %p841_p5 = scmp.lt.u32.totalorder %s834_s13, %s1337_s1 }
  0x15   : > { %p836_p13 = pneg %p1112_p11 }
  0x17   : > { %p837_p0 = pnand %p836_p13, %p835_p12 }
  0x19   : > { %p838_p3 = pneg %p837_p0 }
  0x1b   : > { %p843_p7 = pnand %p841_p5, %p838_p3 }
  0x1d   : > { %846 = shalt.err (!%p843_p7)
}
  0x1e   : > { %s847_s24 = scalar_lea.vmem %s1105_s7, 512  ;;  %p855_p1 = scmp.lt.s32.totalorder %s1105_s7, %s1105_s7 }
  0x1f   : > { %p848_p9 = scmp.ne.s32.totalorder %s1105_s7, %s847_s24  ;;  %p856_p12 = scmp.lt.s32.totalorder %s847_s24, %s847_s24 }
  0x21   : > { %p850_p10 = pnand %p848_p9, %p836_p13  ;;  %p857_p0 = por %p856_p12, %p855_p1 }
  0x23   : > { %p851_p6 = pneg %p850_p10 }
  0x25   : > { %p858_p4 = pnand %p857_p0, %p851_p6 }
  0x27   : > { %861 = shalt.err (!%p858_p4)
}
  0x28   : > { %s1345_s25 = smov 128   ;;  %s1011_s6 = smov 8  }
  0x29   : > { %759 = dma.hbm_to_vmem [thread:$0]  (!%p1112_p11), %s1337_s1, 512, %s1105_s7, [#allocation7], %s1345_s25, %s1345_s25, %s1011_s6  }
  0x2a   : > { %s862_s14 = scalar_lea.hbm %s1339_s3, 512 }
  0x2b   : > { %p863_p1 = scmp.ne.s32.totalorder %s1339_s3, %s862_s14  ;;  %p869_p10 = scmp.lt.u32.totalorder %s862_s14, %s1339_s3 }
  0x2d   : > { %p865_p4 = pnand %p863_p1, %p836_p13 }
  0x2f   : > { %p866_p6 = pneg %p865_p4 }
  0x31   : > { %p871_p3 = pnand %p869_p10, %p866_p6 }
  0x33   : > { %874 = shalt.err (!%p871_p3)
}
  0x34   : > { %s875_s7 = scalar_lea.vmem %s1116_s10, 512  ;;  %p883_p12 = scmp.lt.s32.totalorder %s1116_s10, %s1116_s10 }
  0x35   : > { %p876_p5 = scmp.ne.s32.totalorder %s1116_s10, %s875_s7  ;;  %p884_p0 = scmp.lt.s32.totalorder %s875_s7, %s875_s7 }
  0x37   : > { %p878_p7 = pnand %p876_p5, %p836_p13  ;;  %p885_p1 = por %p884_p0, %p883_p12 }
  0x39   : > { %p879_p9 = pneg %p878_p7 }
  0x3b   : > { %p886_p4 = pnand %p885_p1, %p879_p9 }
  0x3d   : > { %889 = shalt.err (!%p886_p4)
}
  0x3e   : > { %762 = dma.hbm_to_vmem [thread:$0]  (!%p1112_p11), %s1339_s3, 512, %s1116_s10, [#allocation7], %s1345_s25, %s1345_s25, %s1011_s6  }
  0x3f   : > { %s34_s8 = sadd.s32 1, %s1002_s22  ;;  %s43_s12 = sadd.s32 1, %s994_s20 }
  0x40   : > { %p36_p13 = scmp.ge.s32.totalorder %s34_s8, 2  ;;  %p50_p6 = scmp.ne.s32.totalorder %s994_s20, %s990_s19 }
  0x41   : > { %p51_p10 = scmp.eq.s32.totalorder %s1006_s23, 0  ;;  %p773_p3 = scmp.lt.s32.totalorder %s1006_s23, 2 }
  0x42   : > { %s1367_s8 = smov (%p36_p13, %s34_s8), 0  ;;  %p1186_p7 = por %p1085_p2, %p50_p6 }
  0x43   : > { %p52_p5 = por %p51_p10, %p50_p6  ;;  %s38_s14 = ssub.s32 %s1002_s22, %s1367_s8 }
  0x44   : > { %s1353_s13 = scalar_select %p1186_p7, 1, 0 }
  0x45   : > { %s222_s15 = sand.u32 1, %s994_s20   ;;  %p41_p9 = scmp.eq.s32.totalorder %s38_s14, 0 }
  0x46   : > { %s683_s10 = sshll.u32 %s222_s15, 6  ;;  %s699_s16 = sshll.u32 %s1002_s22, 10 }
  0x47   : > { %s1195_s17 = scalar_select %p41_p9, %s994_s20, %s43_s12  }
  0x48   : > { %s1200_s9 = scalar_lea.hbm %s1336_s0, %s699_s16  ;;  %s226_s27 = scalar_lea.vmem [#allocation3], %s683_s10 }
  0x49   : > { %s234_s11 = sshll.u32 %s226_s27, 4  ;;  %p1204_p2 = pnand %p773_p3, %p52_p5  ;;  %s1208_s11 = int_to_ptr.vmem [resolvable:$true] %s234_s11 }
  0x4a   : > { %s1210_s12 = scalar_lea.sflag [#allocation4], %s222_s15  ;;  %s890_s14 = scalar_lea.hbm %s1200_s9, 1024 }
  0x4b   : > { %p891_p11 = scmp.ne.s32.totalorder %s1200_s9, %s890_s14  ;;  %p892_p12 = pneg %p1204_p2 }
  0x4c   : > { %s895_s24 = scalar_lea.hbm %s1336_s0, 2048  ;;  %p896_p4 = scmp.lt.u32.totalorder %s1200_s9, %s1336_s0 }
  0x4d   : > { %p893_p0 = pnand %p892_p12, %p891_p11  ;;  %p897_p13 = scmp.lt.u32.totalorder %s895_s24, %s890_s14 }
  0x4e   : > { %p899_p10 = scmp.lt.u32.totalorder %s890_s14, %s1200_s9 }
  0x4f   : > { %p894_p1 = pneg %p893_p0  ;;  %p898_p6 = por %p897_p13, %p896_p4 }
  0x51   : > { %p900_p3 = por %p899_p10, %p898_p6 }
  0x53   : > { %p901_p5 = pnand %p900_p3, %p894_p1 }
  0x55   : > { %904 = shalt.err (!%p901_p5)
}
  0x56   : > { %s905_s15 = scalar_lea.vmem %s1208_s11, 1024  ;;  %s1012_s10 = smov [#allocation3]  }
  0x57   : > { %p906_p9 = scmp.ne.s32.totalorder %s1208_s11, %s905_s15  ;;  %s910_s16 = sshll.u32 %s1012_s10, 4  ;;  %s911_s16 = int_to_ptr.vmem [resolvable:$false] %s910_s16 }
  0x58   : > { %s912_s7 = scalar_lea.vmem %s911_s16, 2048  ;;  %p913_p7 = scmp.lt.s32.totalorder %s1208_s11, %s911_s16 }
  0x59   : > { %p908_p11 = pnand %p906_p9, %p892_p12  ;;  %p914_p4 = scmp.lt.s32.totalorder %s912_s7, %s905_s15 }
  0x5b   : > { %p909_p0 = pneg %p908_p11  ;;  %p915_p13 = por %p914_p4, %p913_p7 }
  0x5d   : > { %p916_p6 = pnand %p915_p13, %p909_p0 }
  0x5f   : > { %919 = shalt.err (!%p916_p6)
}
  0x60   : > { %s1355_s14 = smov 128   ;;  %246 = sbr.rel (%p1101_p8) target bundleno = 601 (0x259), region = 40 }
  0x61   : > { %766 = dma.hbm_to_vmem [thread:$0]  (!%p1204_p2), %s1200_s9, 1024, %s1208_s11, %s1210_s12, %s1355_s14, %s1355_s14, %s1011_s6  }
  0x62   : > { %s1244_s24 = sand.u32 (!%p1101_p8), 1, %s990_s19   ;;  %p1356_p7 = scmp.ne.s32.totalorder (!%p1101_p8), %s1349_s28, 0 }
  0x63   : > { %s687_s27 = sshll.u32 (!%p1101_p8), %s1244_s24, 6  ;;  %s249_s15 = scalar_lea.sflag (!%p1101_p8), [#allocation4], %s1244_s24 }
  0x64   : > { %s252_s10 = scalar_lea.vmem (!%p1101_p8), [#allocation3], %s687_s27 }
  0x67   : > { %973 = dma.done.wait (%p1356_p7), %s249_s15, 1024  }
  0x68   : > { %975 = vsyncadd (%p1356_p7), %s249_s15, 4294966272  ;;  %p1357_p12 = scmp.ne.s32.totalorder %s1347_s26, 0 }
  0x6a   : > { %977 = dma.done.wait (%p1357_p12), [#allocation7], 1024  }
  0x6b   : > { %979 = vsyncadd (%p1357_p12), [#allocation7], 4294966272  ;;  %vm292_vm0 = vcmask 261120   ;;  %v1013_v0 = vmov 0.0|0.0   ;;  %v1014_v1 = vmov 0.0   ;;  %vm1015_vm1 = vmmov 0  }
  0x6c   : > { %732 = vmatprep.subr.bf16.mxu0 %v1013_v0  ;;  %293 = vst.msk [vmem:[#allocation2] sm:$0xff] %vm292_vm0, %v1014_v1  ;;  %738 = vmatprep.subr.bf16.mxu1 %v1013_v0  ;;  %v390_v2 = vld [vmem:[#allocation6] sm:$0xff]  ;;  %v391_v3 = vld [vmem:[#allocation6 + $0x8] sm:$0xff]  ;;  %v392_v4 = vld [vmem:[#allocation6 + $0x10] sm:$0xff]  ;;  %vm368_vm2 = vcmask 1041409   ;;  %vm370_vm3 = vcmask 1042434  }
  0x6d   : > { %718 = vmatprep.mubr.msk.f32.mxu0 %vm1015_vm1, %v1014_v1  ;;  %729 = vmatprep.mubr.msk.f32.mxu1 %vm1015_vm1, %v1014_v1  ;;  %v733_v5 = vpack.c.bf16 %v391_v3, %v390_v2  ;;  %v393_v6 = vld [vmem:[#allocation6 + $0x18] sm:$0xff]  ;;  %v294_v7 = vld [vmem:[%s252_s10] sm:$0xff]  ;;  %v295_v8 = vld [vmem:[%s252_s10 + $0x8] sm:$0xff]  ;;  %vm372_vm4 = vcmask 1043459   ;;  %vm374_vm5 = vcmask 1044484   ;;  %vm376_vm6 = vcmask 1045509  }
  0x6e   : > { %v296_v9 = vld [vmem:[%s252_s10 + $0x10] sm:$0xff]  ;;  %v297_v10 = vld [vmem:[%s252_s10 + $0x18] sm:$0xff]  ;;  %v298_v11 = vld [vmem:[%s252_s10 + $0x20] sm:$0xff]  ;;  %v303_v12 = vsel %vm292_vm0, %v294_v7, 0.0  ;;  %v310_v13 = vsel %vm292_vm0, %v295_v8, 0.0  ;;  %v736_v14 = vpack.c.bf16 %v393_v6, %v392_v4  ;;  %vm378_vm7 = vcmask 1046534  }
  0x6f   : > { %734 = vmatpush3.bf16.msra.mxu0 %v733_v5  ;;  %v299_v15 = vld [vmem:[%s252_s10 + $0x28] sm:$0xff]  ;;  %v300_v16 = vld [vmem:[%s252_s10 + $0x30] sm:$0xff]  ;;  %v301_v17 = vld [vmem:[%s252_s10 + $0x38] sm:$0xff]  ;;  %v304_v18 = vrot.slane %v303_v12, 4  ;;  %v311_v19 = vrot.slane %v310_v13, 4  ;;  %v317_v20 = vsel %vm292_vm0, %v296_v9, 0.0 }
  0x70   : > { %735 = vmatprep.subr.bf16.mxu0 %v1013_v0  ;;  %v318_v21 = vrot.slane %v317_v20, 4  ;;  %v324_v22 = vsel %vm292_vm0, %v297_v10, 0.0  ;;  %v331_v23 = vsel %vm292_vm0, %v298_v11, 0.0  ;;  %v338_v24 = vsel %vm292_vm0, %v299_v15, 0.0  ;;  %s690_s30 = sshll.u32 %s1244_s24, 3  ;;  %s696_s9 = sshll.u32 %s998_s21, 7 }
  0x71   : > { %v305_v25 = vadd.f32 %v304_v18, %v303_v12  ;;  %v312_v26 = vadd.f32 %v311_v19, %v310_v13  ;;  %v325_v27 = vrot.slane %v324_v22, 4  ;;  %v332_v28 = vrot.slane %v331_v23, 4  ;;  %s286_s11 = scalar_lea.vmem [#allocation9], %s690_s30  ;;  %s1287_s14 = scalar_lea.hbm %s1341_s5, %s696_s9 }
  0x72   : > { %v319_v29 = vadd.f32 %v318_v21, %v317_v20  ;;  %v339_v30 = vrot.slane %v338_v24, 4  ;;  %v345_v31 = vsel %vm292_vm0, %v300_v16, 0.0  ;;  %v352_v32 = vsel %vm292_vm0, %v301_v17, 0.0  ;;  %v479_v20 = vld [vmem:[#allocation8] sm:$0xff]  ;;  %v480_v21 = vld [vmem:[#allocation8 + $0x8] sm:$0xff]  ;;  %s578_s12 = sshll.u32 %s286_s11, 4  ;;  %s1289_s12 = int_to_ptr.vmem [resolvable:$true] %s578_s12 }
  0x73   : > { %737 = vmatpush3.bf16.msra.mxu0 %v736_v14  ;;  %v306_v33 = vrot.slane %v305_v25, 2  ;;  %v313_v34 = vrot.slane %v312_v26, 2  ;;  %v326_v35 = vadd.f32 %v325_v27, %v324_v22  ;;  %v333_v36 = vadd.f32 %v332_v28, %v331_v23  ;;  %v359_v13 = vld [vmem:[#allocation2] sm:$0xff]  ;;  %v481_v23 = vld [vmem:[#allocation8 + $0x10] sm:$0xff]  ;;  %s565_s27 = scalar_lea.sflag [#allocation5], %s1244_s24  ;;  %s920_s15 = scalar_lea.vmem %s1289_s12, 128 }
  0x74   : > { %v320_v37 = vrot.slane %v319_v29, 2  ;;  %v340_v38 = vadd.f32 %v339_v30, %v338_v24  ;;  %v346_v39 = vrot.slane %v345_v31, 4  ;;  %v353_v40 = vrot.slane %v352_v32, 4  ;;  %v482_v24 = vld [vmem:[#allocation8 + $0x18] sm:$0xff]  ;;  %p921_p8 = scmp.ne.s32.totalorder %s1289_s12, %s920_s15  ;;  %p1358_p2 = scmp.ne.s32.totalorder %s1353_s13, 0 }
  0x75   : > { %v307_v41 = vadd.f32 %v306_v33, %v305_v25  ;;  %v314_v42 = vadd.f32 %v313_v34, %v312_v26  ;;  %v327_v43 = vrot.slane %v326_v35, 2  ;;  %v334_v44 = vrot.slane %v333_v36, 2  ;;  %v691_v26 = vld [vmem:[%s1338_s2] ss:$0 sm:$0xff]  ;;  %s1016_s21 = smov [#allocation9]  }
  0x76   : > { %v321_v45 = vadd.f32 %v320_v37, %v319_v29  ;;  %v341_v46 = vrot.slane %v340_v38, 2  ;;  %v347_v47 = vadd.f32 %v346_v39, %v345_v31  ;;  %v354_v48 = vadd.f32 %v353_v40, %v352_v32  ;;  %v693_v34 = vld [vmem:[%s1340_s4] ss:$0 sm:$0xff]  ;;  %p922_p1 = pnand %p921_p8, %p1358_p2  ;;  %s924_s10 = sshll.u32 %s1016_s21, 4  ;;  %s925_s10 = int_to_ptr.vmem [resolvable:$false] %s924_s10 }
  0x77   : > { %v308_v49 = vrot.slane %v307_v41, 1  ;;  %v315_v50 = vrot.slane %v314_v42, 1  ;;  %v328_v51 = vadd.f32 %v327_v43, %v326_v35  ;;  %v335_v52 = vadd.f32 %v334_v44, %v333_v36  ;;  %s926_s26 = scalar_lea.vmem %s925_s10, 256  ;;  %p927_p3 = scmp.lt.s32.totalorder %s1289_s12, %s925_s10 }
  0x78   : > { %v322_v53 = vrot.slane %v321_v45, 1  ;;  %v342_v54 = vadd.f32 %v341_v46, %v340_v38  ;;  %v348_v55 = vrot.slane %v347_v47, 2  ;;  %v355_v56 = vrot.slane %v354_v48, 2  ;;  %p923_p10 = pneg %p922_p1  ;;  %p928_p5 = scmp.lt.s32.totalorder %s926_s26, %s920_s15 }
  0x79   : > { %v309_v57 = vadd.f32 %v308_v49, %v307_v41  ;;  %v316_v58 = vadd.f32 %v315_v50, %v314_v42  ;;  %v329_v59 = vrot.slane %v328_v51, 1  ;;  %v336_v60 = vrot.slane %v335_v52, 1 }
  0x7a   : > { %v323_v61 = vadd.f32 %v322_v53, %v321_v45  ;;  %v343_v62 = vrot.slane %v342_v54, 1  ;;  %v349_v63 = vadd.f32 %v348_v55, %v347_v47  ;;  %v356_v1 = vadd.f32 %v355_v56, %v354_v48  ;;  %p929_p9 = por %p928_p5, %p927_p3 }
  0x7b   : > { %v330_v2 = vadd.f32 %v329_v59, %v328_v51  ;;  %v337_v3 = vadd.f32 %v336_v60, %v335_v52  ;;  %v369_v4 = vsel %vm368_vm2, %v316_v58, %v309_v57  ;;  %vm380_vm8 = vcmask 1047559  }
  0x7c   : > { %v344_v5 = vadd.f32 %v343_v62, %v342_v54  ;;  %v350_v6 = vrot.slane %v349_v63, 1  ;;  %v357_v7 = vrot.slane %v356_v1, 1  ;;  %v371_v8 = vsel %vm370_vm3, %v323_v61, %v369_v4  ;;  %p930_p11 = pnand %p929_p9, %p923_p10 }
  0x7d   : > { %v373_v9 = vsel %vm372_vm4, %v330_v2, %v371_v8  ;;  %v739_v22 = vpack.c.bf16 %v480_v21, %v479_v20  ;;  %v742_v25 = vpack.c.bf16 %v482_v24, %v481_v23 }
  0x7e   : > { %v351_v10 = vadd.f32 %v350_v6, %v349_v63  ;;  %v358_v11 = vadd.f32 %v357_v7, %v356_v1  ;;  %v375_v12 = vsel %vm374_vm5, %v337_v3, %v373_v9 }
  0x7f   : > { %v377_v14 = vsel %vm376_vm6, %v344_v5, %v375_v12  ;;  %740 = vmatpush3.bf16.msra.mxu1 %v739_v22 }
  0x80   : > { %v379_v15 = vsel %vm378_vm7, %v351_v10, %v377_v14  ;;  %741 = vmatprep.subr.bf16.mxu1 %v1013_v0 }
  0x81   : > { %v381_v16 = vsel %vm380_vm8, %v358_v11, %v379_v15 }
  0x82   : > { %v383_v17 = vadd.f32 %v381_v16, %v359_v13 }
  0x83   : > { %743 = vmatpush3.bf16.msra.mxu1 %v742_v25 }
  0x84   : > { %384 = vst.msk [vmem:[#allocation2] sm:$0xff] %vm292_vm0, %v383_v17 }
  0x8b   : > { %v388_v18 = vld [vmem:[#allocation2] sm:$0xff] }
  0x8c   : > { %v389_v19 = vmul.f32 0.125, %v388_v18 }
  0x8e   : > { %719 = vmatmul.mubr.msk.f32.vlgmr.msra.gmra.mrb[0].mxu0 %vm292_vm0, %v389_v19 }
 0x161   : > { %v470_v27 = vpop.f32.mrb[0].mxu0 }
 0x162   : > { %v471_v28 = vadd.f32 %v691_v26, %v470_v27  ;;  %v720_v29 = vpop.f32.mrb[1].mxu0 }
 0x164   : > { %v475_v30 = vmul.f32 0.70710677, %v471_v28  ;;  %v474_v32 = vmul.f32 0.5, %v471_v28 }
 0x166   : > { %832 = verf.f32 %v475_v30 }
 0x170   : > { %v833_v31 = vpop.eup %832 }
 0x171   : > { %v477_v33 = vadd.f32 1.0, %v833_v31 }
 0x173   : > { %v478_v0 = vmul.f32 %v477_v33, %v474_v32 }
 0x175   : > { %730 = vmatmul.mubr.msk.f32.vlgmr.msra.gmra.mrb[0].mxu1 %vm292_vm0, %v478_v0 }
 0x248   : > { %v559_v35 = vpop.f32.mrb[0].mxu1 }
 0x249   : > { %v560_v36 = vadd.f32 %v693_v34, %v559_v35  ;;  %v731_v37 = vpop.f32.mrb[1].mxu1 }
 0x24b   : > { %563 = vst [vmem:[%s286_s11] sm:$0xff] %v560_v36 }
 0x24c   : > { %933 = shalt.err (!%p930_p11)
}
 0x24d   : > { %s934_s24 = scalar_lea.hbm %s1287_s14, 128  ;;  %s938_s25 = scalar_lea.hbm %s1341_s5, 256 }
 0x24e   : > { %p935_p0 = scmp.ne.s32.totalorder %s1287_s14, %s934_s24  ;;  %p939_p6 = scmp.lt.u32.totalorder %s1287_s14, %s1341_s5 }
 0x24f   : > { %p940_p7 = scmp.lt.u32.totalorder %s938_s25, %s934_s24  ;;  %p942_p8 = scmp.lt.u32.totalorder %s934_s24, %s1287_s14 }
 0x250   : > { %p936_p4 = pnand %p935_p0, %p1358_p2 }
 0x251   : > { %p941_p12 = por %p940_p7, %p939_p6 }
 0x252   : > { %p937_p13 = pneg %p936_p4 }
 0x253   : > { %p943_p1 = por %p942_p8, %p941_p12 }
 0x255   : > { %p944_p10 = pnand %p943_p1, %p937_p13 }
 0x257   : > { %947 = shalt.err (!%p944_p10)
}
 0x258   : > { %754 = dma.vmem_to_hbm [thread:$0]  (%p1358_p2), %s1289_s12, 128, %s1287_s14, %s565_s27  }
 0x259 PF: > { %s590_s11 = sand.u32 1, %s986_s18   ;;  %p1359_p3 = scmp.ne.s32.totalorder %s1350_s29, 0 }
 0x25a   : > { %p1360_p5 = scmp.ge.s32.totalorder %s1006_s23, 2  ;;  %s591_s16 = scalar_lea.sflag [#allocation5], %s590_s11 }
 0x25c   : > { %p768_p9 = pnand %p1360_p5, %p1359_p3 }
 0x25e   : > { %981 = dma.done.wait (!%p768_p9), %s591_s16, 128  }
 0x25f   : > { %983 = vsyncadd (!%p768_p9), %s591_s16, 4294967168  ;;  %s22_s23 = sadd.s32 1, %s1006_s23   ;;  %s1361_s18 = smov %s990_s19 }
 0x260   : > { %p19_p11 = scmp.ge.s32.totalorder %s22_s23, 4   ;;  %s1362_s19 = smov %s994_s20 }
 0x261   : > { %s1363_s20 = smov %s1195_s17  ;;  %s1364_s21 = smov %s1002_s22 }
 0x262   : > { %s1365_s22 = smov %s1367_s8  ;;  %21 = sbr.rel (!%p19_p11) target bundleno = 7 (0x7), region = 101 }
 0x269   :  { %596 = vsyncpa [#allocation4], 1 }
 0x26a   :  { %598 = vsyncpa [#allocation4 + $0x1], 1 }
 0x26b   :  { %599 = vsyncpa [#allocation7], 1 }
 0x26c   :  { %600 = vsyncpa [#allocation5], 1 }
 0x26d   :  { %602 = vsyncpa [#allocation5 + $0x1], 1 }

</bundles_post_ra>
